<compile_context>
chip_gen: v7x
topology: tpu7x:2x2x1
jax: 0.10.0
libtpu: 0.0.40
codegen_flags: <defaults>
</compile_context>

<pallas_src>
import jax
import jax.numpy as jnp
from jax.experimental import pallas as pl
from jax.experimental.pallas import tpu as pltpu


def _fcnet_kernel(x_ref, w1_ref, b1_ref, w2_ref, b2_ref, w3_ref, b3_ref, o_ref):
    # Layer 1: Linear + ReLU  (Dropout = identity in eval)
    h1 = jnp.dot(x_ref[...], w1_ref[...], preferred_element_type=jnp.float32)
    h1 = jnp.maximum(h1 + b1_ref[...], 0.0)
    # Layer 2: Linear + ReLU  (Dropout = identity in eval)
    h2 = jnp.dot(h1.astype(w2_ref.dtype), w2_ref[...],
                 preferred_element_type=jnp.float32)
    h2 = jnp.maximum(h2 + b2_ref[...], 0.0)
    # Output layer: Linear.  w3/b3 are lane-padded to 128 inside VMEM so the MXU
    # work stays lane-dense, but only the first num_classes columns go to HBM.
    out = jnp.dot(h2.astype(w3_ref.dtype), w3_ref[...],
                  preferred_element_type=jnp.float32)
    out = out + b3_ref[...]
    nc = o_ref.shape[-1]
    o_ref[...] = out[:, :nc].astype(o_ref.dtype)


def fcnet_forward(x, params, *, tm_max=4096, use_bf16=False):
    """Fused 3-layer MLP forward, tiled over the batch.

    x: (N, d_in) float32.  Returns (N, num_classes) float32 logits.
    """
    w1, b1, w2, b2, w3, b3 = params
    n, d0 = x.shape
    d1 = w1.shape[1]
    d2 = w2.shape[1]
    num_classes = w3.shape[1]

    # Lane-pad only the last layer's weight/bias (they live in VMEM for the whole
    # grid); the HBM-visible output stays narrow (num_classes lanes).
    c_pad = ((num_classes + 127) // 128) * 128
    w3p = jnp.zeros((d2, c_pad), w3.dtype).at[:, :num_classes].set(w3)
    b3p = jnp.zeros((1, c_pad), b3.dtype).at[:, :num_classes].set(b3)

    if use_bf16:
        # Pure bandwidth play: halves x/weight DMA bytes.  Accumulation stays f32
        # (preferred_element_type) and bias-add/ReLU operate on the f32 accumulator.
        x = x.astype(jnp.bfloat16)
        w1 = w1.astype(jnp.bfloat16)
        w2 = w2.astype(jnp.bfloat16)
        w3p = w3p.astype(jnp.bfloat16)

    # Batch tile: multiple of the sublane packing (8 for f32, 16 for bf16),
    # large by default (amortizes the ~0.35us/step pipeline cost), but chosen so
    # the grid has ~4 steps when the batch allows (2 per v7x TensorCore).
    sub = 16 if use_bf16 else 8
    tm_cap = max(sub, (tm_max // sub) * sub)
    tm_target = ((pl.cdiv(n, 4) + sub - 1) // sub) * sub
    tm = min(tm_cap, max(sub, tm_target))
    grid = (pl.cdiv(n, tm),)
    # NOTE: no jnp.pad(x) — Pallas masks the ragged final tile; out-of-range rows
    # only feed that tile's own dropped output rows (no cross-row reduction here).

    out = pl.pallas_call(
        _fcnet_kernel,
        out_shape=jax.ShapeDtypeStruct((n, num_classes), jnp.float32),
        grid=grid,
        in_specs=[
            # x: one (tm, d0) tile per grid step (double-buffered by Pallas).
            pl.BlockSpec((tm, d0), lambda i: (i, 0)),
            # Weights / biases: same block every step -> stay resident in VMEM.
            pl.BlockSpec((d0, d1), lambda i: (0, 0)),
            pl.BlockSpec((1, d1), lambda i: (0, 0)),
            pl.BlockSpec((d1, d2), lambda i: (0, 0)),
            pl.BlockSpec((1, d2), lambda i: (0, 0)),
            pl.BlockSpec((d2, c_pad), lambda i: (0, 0)),
            pl.BlockSpec((1, c_pad), lambda i: (0, 0)),
        ],
        # Narrow, un-padded writeback: ~64x fewer output HBM bytes than the
        # previous 128-lane padded slab; the 2-lane masked store is cheap.
        out_specs=pl.BlockSpec((tm, num_classes), lambda i: (i, 0)),
        compiler_params=pltpu.CompilerParams(
            # Batch steps are independent: lets v7x shard them across its 2 TCs.
            dimension_semantics=("parallel",),
        ),
    )(x, w1, b1, w2, b2, w3p, b3p)
    return out


def init_params(key, in_features, num_classes=2):
    """Deterministic parameter init.  Shapes follow the PyTorch module:
       Linear(in_features[0]*2, in_features[-2]),
       Linear(in_features[-2], in_features[-1]),
       Linear(in_features[-1], num_classes).
       Weights stored as (in, out)."""
    d0 = in_features[0] * 2
    d1 = in_features[-2]
    d2 = in_features[-1]
    ks = jax.random.split(key, 6)

    def uinit(k, fan_in, shape):
        bound = 1.0 / jnp.sqrt(fan_in)
        return jax.random.uniform(k, shape, jnp.float32, -bound, bound)

    w1 = uinit(ks[0], d0, (d0, d1))
    b1 = uinit(ks[1], d0, (1, d1))
    w2 = uinit(ks[2], d1, (d1, d2))
    b2 = uinit(ks[3], d1, (1, d2))
    w3 = uinit(ks[4], d2, (d2, num_classes))
    b3 = uinit(ks[5], d2, (1, num_classes))
    return (w1, b1, w2, b2, w3, b3)


def fcnet_reference(x, params):
    """Pure-JAX reference for correctness check."""
    w1, b1, w2, b2, w3, b3 = params
    h1 = jnp.maximum(x @ w1 + b1, 0.0)
    h2 = jnp.maximum(h1 @ w2 + b2, 0.0)
    return h2 @ w3 + b3


if __name__ == "__main__":
    # Shapes implied by the module: in_features = [16, 32, 16]
    #   -> Linear(32, 32) -> ReLU -> Linear(32, 16) -> ReLU -> Linear(16, 2)
    in_features = [16, 32, 16]
    num_classes = 2

    key = jax.random.PRNGKey(0)
    kx, kp = jax.random.split(key)
    params = init_params(kp, in_features, num_classes)

    # Case 1: tiny batch -> single grid step.
    batch = 8
    x = jax.random.normal(kx, (batch, in_features[0] * 2), jnp.float32)
    out = jax.block_until_ready(fcnet_forward(x, params))
    ref = fcnet_reference(x, params)
    assert out.shape == (batch, num_classes), out.shape
    assert jnp.allclose(out, ref, atol=1e-5, rtol=1e-5), "mismatch vs reference (small batch)"

    # Case 2: ragged batch (not a multiple of the tile) -> multi-step grid with a
    # masked final tile and narrow writeback; no host-side padding pass over x.
    batch2 = 200
    x2 = jax.random.normal(kx, (batch2, in_features[0] * 2), jnp.float32)
    out2 = jax.block_until_ready(fcnet_forward(x2, params, tm_max=64))
    ref2 = fcnet_reference(x2, params)
    assert out2.shape == (batch2, num_classes), out2.shape
    assert jnp.allclose(out2, ref2, atol=1e-5, rtol=1e-5), "mismatch vs reference (grid batch)"

    # Case 3: opt-in bf16 inputs/weights (f32 accumulation) -> loose tolerance.
    out3 = jax.block_until_ready(fcnet_forward(x2, params, use_bf16=True))
    assert out3.shape == (batch2, num_classes), out3.shape
    assert jnp.allclose(out3, ref2, atol=0.1, rtol=0.1), "mismatch vs reference (bf16)"

    print("KERNEL_OK")
</pallas_src>

<mosaic_0001>
module attributes {stable_mosaic.version = 11 : i64} {
  func.func @_fcnet_kernel(%arg0: i32, %arg1: memref<8x32xf32, #tpu.memory_space<vmem>>, %arg2: memref<32x32xf32, #tpu.memory_space<vmem>>, %arg3: memref<1x32xf32, #tpu.memory_space<vmem>>, %arg4: memref<32x16xf32, #tpu.memory_space<vmem>>, %arg5: memref<1x16xf32, #tpu.memory_space<vmem>>, %arg6: memref<16x128xf32, #tpu.memory_space<vmem>>, %arg7: memref<1x128xf32, #tpu.memory_space<vmem>>, %arg8: memref<8x2xf32, #tpu.memory_space<vmem>>) attributes {dimension_semantics = [#tpu.dimension_semantics<parallel>], iteration_bounds = array<i64: 1>, scalar_prefetch = 0 : i64, scratch_operands = 0 : i64, tpu.core_type = #tpu.core_type<tc>, window_params = [{transform_indices = @transform_0, window_bounds = array<i64: 8, 32>}, {pipeline_mode = #tpu.pipeline_mode<synchronous>, transform_indices = @transform_1, window_bounds = array<i64: 32, 32>}, {pipeline_mode = #tpu.pipeline_mode<synchronous>, transform_indices = @transform_2, window_bounds = array<i64: 1, 32>}, {pipeline_mode = #tpu.pipeline_mode<synchronous>, transform_indices = @transform_3, window_bounds = array<i64: 32, 16>}, {pipeline_mode = #tpu.pipeline_mode<synchronous>, transform_indices = @transform_4, window_bounds = array<i64: 1, 16>}, {pipeline_mode = #tpu.pipeline_mode<synchronous>, transform_indices = @transform_5, window_bounds = array<i64: 16, 128>}, {pipeline_mode = #tpu.pipeline_mode<synchronous>, transform_indices = @transform_6, window_bounds = array<i64: 1, 128>}, {transform_indices = @transform_7, window_bounds = array<i64: 8, 2>}]} {
    %c0 = arith.constant 0 : index
    %c0_0 = arith.constant 0 : index
    %0 = vector.load %arg1[%c0, %c0_0] : memref<8x32xf32, #tpu.memory_space<vmem>>, vector<8x32xf32>
    %c0_1 = arith.constant 0 : index
    %c0_2 = arith.constant 0 : index
    %1 = vector.load %arg2[%c0_1, %c0_2] : memref<32x32xf32, #tpu.memory_space<vmem>>, vector<32x32xf32>
    %cst = arith.constant dense<0.000000e+00> : vector<8x32xf32>
    %2 = tpu.matmul %0, %1, %cst {dimension_numbers = #tpu.dot_dimension_numbers<[1], [0], [0], [1], [0, 0, 1, 1], [], []>} : vector<8x32xf32>, vector<32x32xf32>, vector<8x32xf32> -> vector<8x32xf32>
    %c0_3 = arith.constant 0 : index
    %c0_4 = arith.constant 0 : index
    %3 = vector.load %arg3[%c0_3, %c0_4] : memref<1x32xf32, #tpu.memory_space<vmem>>, vector<1x32xf32>
    %4 = vector.broadcast %3 : vector<1x32xf32> to vector<8x32xf32>
    %5 = arith.addf %2, %4 : vector<8x32xf32>
    %cst_5 = arith.constant 0.000000e+00 : f32
    %6 = vector.broadcast %cst_5 : f32 to vector<8x32xf32>
    %7 = arith.maximumf %5, %6 : vector<8x32xf32>
    %c0_6 = arith.constant 0 : index
    %c0_7 = arith.constant 0 : index
    %8 = vector.load %arg4[%c0_6, %c0_7] : memref<32x16xf32, #tpu.memory_space<vmem>>, vector<32x16xf32>
    %cst_8 = arith.constant dense<0.000000e+00> : vector<8x16xf32>
    %9 = tpu.matmul %7, %8, %cst_8 {dimension_numbers = #tpu.dot_dimension_numbers<[1], [0], [0], [1], [0, 0, 1, 1], [], []>} : vector<8x32xf32>, vector<32x16xf32>, vector<8x16xf32> -> vector<8x16xf32>
    %c0_9 = arith.constant 0 : index
    %c0_10 = arith.constant 0 : index
    %10 = vector.load %arg5[%c0_9, %c0_10] : memref<1x16xf32, #tpu.memory_space<vmem>>, vector<1x16xf32>
    %11 = vector.broadcast %10 : vector<1x16xf32> to vector<8x16xf32>
    %12 = arith.addf %9, %11 : vector<8x16xf32>
    %cst_11 = arith.constant 0.000000e+00 : f32
    %13 = vector.broadcast %cst_11 : f32 to vector<8x16xf32>
    %14 = arith.maximumf %12, %13 : vector<8x16xf32>
    %c0_12 = arith.constant 0 : index
    %c0_13 = arith.constant 0 : index
    %15 = vector.load %arg6[%c0_12, %c0_13] : memref<16x128xf32, #tpu.memory_space<vmem>>, vector<16x128xf32>
    %cst_14 = arith.constant dense<0.000000e+00> : vector<8x128xf32>
    %16 = tpu.matmul %14, %15, %cst_14 {dimension_numbers = #tpu.dot_dimension_numbers<[1], [0], [0], [1], [0, 0, 1, 1], [], []>} : vector<8x16xf32>, vector<16x128xf32>, vector<8x128xf32> -> vector<8x128xf32>
    %c0_15 = arith.constant 0 : index
    %c0_16 = arith.constant 0 : index
    %17 = vector.load %arg7[%c0_15, %c0_16] : memref<1x128xf32, #tpu.memory_space<vmem>>, vector<1x128xf32>
    %18 = vector.broadcast %17 : vector<1x128xf32> to vector<8x128xf32>
    %19 = arith.addf %16, %18 : vector<8x128xf32>
    %20 = vector.extract_strided_slice %19 {offsets = [0, 0], sizes = [8, 2], strides = [1, 1]} : vector<8x128xf32> to vector<8x2xf32>
    %c0_17 = arith.constant 0 : index
    %c0_18 = arith.constant 0 : index
    %21 = vector.load %arg8[%c0_17, %c0_18] : memref<8x2xf32, #tpu.memory_space<vmem>>, vector<8x2xf32>
    tpu.vector_store %arg8[%c0_17, %c0_18], %20 {strides = array<i32>} : memref<8x2xf32, #tpu.memory_space<vmem>>, vector<8x2xf32>,
    return
  }
  func.func @transform_0(%arg0: i32) -> (i32, i32) {
    %c0_i32 = arith.constant 0 : i32
    %c0_i32_0 = arith.constant 0 : i32
    return %arg0, %c0_i32 : i32, i32
  }
  func.func @transform_1(%arg0: i32) -> (i32, i32) {
    %c0_i32 = arith.constant 0 : i32
    %c0_i32_0 = arith.constant 0 : i32
    %c0_i32_1 = arith.constant 0 : i32
    return %c0_i32, %c0_i32_0 : i32, i32
  }
  func.func @transform_2(%arg0: i32) -> (i32, i32) {
    %c0_i32 = arith.constant 0 : i32
    %c0_i32_0 = arith.constant 0 : i32
    %c0_i32_1 = arith.constant 0 : i32
    return %c0_i32, %c0_i32_0 : i32, i32
  }
  func.func @transform_3(%arg0: i32) -> (i32, i32) {
    %c0_i32 = arith.constant 0 : i32
    %c0_i32_0 = arith.constant 0 : i32
    %c0_i32_1 = arith.constant 0 : i32
    return %c0_i32, %c0_i32_0 : i32, i32
  }
  func.func @transform_4(%arg0: i32) -> (i32, i32) {
    %c0_i32 = arith.constant 0 : i32
    %c0_i32_0 = arith.constant 0 : i32
    %c0_i32_1 = arith.constant 0 : i32
    return %c0_i32, %c0_i32_0 : i32, i32
  }
  func.func @transform_5(%arg0: i32) -> (i32, i32) {
    %c0_i32 = arith.constant 0 : i32
    %c0_i32_0 = arith.constant 0 : i32
    %c0_i32_1 = arith.constant 0 : i32
    return %c0_i32, %c0_i32_0 : i32, i32
  }
  func.func @transform_6(%arg0: i32) -> (i32, i32) {
    %c0_i32 = arith.constant 0 : i32
    %c0_i32_0 = arith.constant 0 : i32
    %c0_i32_1 = arith.constant 0 : i32
    return %c0_i32, %c0_i32_0 : i32, i32
  }
  func.func @transform_7(%arg0: i32) -> (i32, i32) {
    %c0_i32 = arith.constant 0 : i32
    %c0_i32_0 = arith.constant 0 : i32
    return %arg0, %c0_i32 : i32, i32
  }
}

</mosaic_0001>

<bundles_post_ra>
// kernel: tpu_custom_call.1
= control target key start
LH: loop header
LB: loop body
LE: loop exit
PB: predicated region body
PF: predicated region fallthrough
CT: control target
= control target key end

     0   :  { %12 = vsyncpa [#allocation3], 0  ;;  %s391_s24 = smov [#allocation2]   ;;  %s492_s0 = inlined_call_operand.hbm [shape: f32[8,32], index: 0, kind: input, shape index: {}]   ;;  %s493_s1 = inlined_call_operand.vmem [shape: f32[32,32], index: 1, kind: input, shape index: {}]   ;;  %s494_s2 = inlined_call_operand.vmem [shape: f32[1,32], index: 2, kind: input, shape index: {}]   ;;  %s495_s3 = inlined_call_operand.vmem [shape: f32[32,16], index: 3, kind: input, shape index: {}]   ;;  %s496_s4 = inlined_call_operand.vmem [shape: f32[1,16], index: 4, kind: input, shape index: {}]   ;;  %s497_s5 = inlined_call_operand.vmem [shape: f32[16,128], index: 5, kind: input, shape index: {}]   ;;  %s498_s6 = inlined_call_operand.vmem [shape: f32[1,128], index: 6, kind: input, shape index: {}]   ;;  %s499_s7 = inlined_call_operand.vmem [shape: f32[8,2], index: 7, kind: output, shape index: {}]  }
   0x1   :  { %s19_s25 = sshll.u32 %s391_s24, 4  ;;  %s367_s28 = scalar_lea.hbm %s492_s0, 128  ;;  %s20_s25 = int_to_ptr.vmem [resolvable:$true] %s19_s25 }
   0x2   :  { %p368_p0 = scmp.ne.s32.totalorder %s492_s0, %s367_s28  ;;  %p371_p1 = scmp.lt.u32.totalorder %s367_s28, %s492_s0 }
   0x4   :  { %p373_p2 = pnand %p371_p1, %p368_p0 }
   0x6   :  { %376 = shalt.err (!%p373_p2)
}
   0x7   :  { %s377_s10 = scalar_lea.vmem %s20_s25, 128  ;;  %p382_p4 = scmp.lt.s32.totalorder %s20_s25, %s20_s25 }
   0x8   :  { %p378_p3 = scmp.ne.s32.totalorder %s20_s25, %s377_s10  ;;  %p383_p5 = scmp.lt.s32.totalorder %s377_s10, %s377_s10 }
   0xa   :  { %p384_p6 = por %p383_p5, %p382_p4 }
   0xc   :  { %p385_p7 = pnand %p384_p6, %p378_p3 }
   0xe   :  { %388 = shalt.err (!%p385_p7)
}
   0xf   :  { %22 = dma.hbm_to_vmem [thread:$0]  %s492_s0, 128, %s20_s25, [#allocation3]  }
  0x10   :  { %389 = dma.done.wait [#allocation3], 128  }
  0x11   :  { %390 = vsyncadd [#allocation3], 4294967168  ;;  %v392_v0 = vmov 0.0|0.0   ;;  %vm393_vm0 = vmmov 0   ;;  %v394_v1 = vmov 0.0   ;;  %v39_v2 = vld [vmem:[%s493_s1] sm:$0xff] }
  0x12   :  { %348 = vmatprep.subr.bf16.mxu0 %v392_v0  ;;  %327 = vmatprep.mubr.msk.f32.mxu0 %vm393_vm0, %v394_v1  ;;  %v40_v3 = vld [vmem:[%s493_s1 + $0x8] sm:$0xff]  ;;  %v41_v4 = vld [vmem:[%s493_s1 + $0x10] sm:$0xff]  ;;  %v42_v6 = vld [vmem:[%s493_s1 + $0x18] sm:$0xff]  ;;  %vm50_vm1 = vcmask 261120   ;;  %vm219_vm2 = vcmask 130048   ;;  %vm293_vm3 = vcmask 15360  }
  0x13   :  { %354 = vmatprep.subr.bf16.mxu1 %v392_v0  ;;  %338 = vmatprep.mubr.msk.f32.mxu1 %vm393_vm0, %v394_v1  ;;  %v349_v5 = vpack.c.bf16 %v40_v3, %v39_v2  ;;  %v125_v7 = vld [vmem:[%s495_s3] sm:$0xff]  ;;  %v126_v8 = vld [vmem:[%s495_s3 + $0x8] sm:$0xff]  ;;  %v352_v9 = vpack.c.bf16 %v42_v6, %v41_v4  ;;  %v127_v12 = vld [vmem:[%s495_s3 + $0x10] sm:$0xff] }
  0x14   :  { %v355_v10 = vpack.c.bf16 %v126_v8, %v125_v7  ;;  %v38_v11 = vld [vmem:[#allocation2] sm:$0xff]  ;;  %v128_v13 = vld [vmem:[%s495_s3 + $0x18] sm:$0xff]  ;;  %v211_v21 = vld [vmem:[%s497_s5 + $0x8] sm:$0xff] }
  0x15   :  { %350 = vmatpush3.bf16.msra.mxu0 %v349_v5  ;;  %v358_v14 = vpack.c.bf16 %v128_v13, %v127_v12  ;;  %v300_v15 = vld [vmem:[%s494_s2] ss:$0 sm:$0xff] }
  0x16   :  { %351 = vmatprep.subr.bf16.mxu0 %v392_v0  ;;  %356 = vmatpush3.bf16.msra.mxu1 %v355_v10  ;;  %v210_v20 = vld [vmem:[%s497_s5] sm:$0xff] }
  0x17   :  { %357 = vmatprep.subr.bf16.mxu1 %v392_v0  ;;  %v361_v22 = vpack.c.bf16 %v211_v21, %v210_v20  ;;  %v302_v23 = vld [vmem:[%s496_s4] ss:$0 sm:$0xff] }
  0x18   :  { %v304_v28 = vld [vmem:[%s498_s6] ss:$0 sm:$0xff] }
  0x19   :  { %353 = vmatpush3.bf16.msra.mxu0 %v352_v9 }
  0x1a   :  { %360 = vmatprep.subr.bf16.mxu0 %v392_v0  ;;  %359 = vmatpush3.bf16.msra.mxu1 %v358_v14 }
  0x1c   :  { %328 = vmatmul.mubr.msk.f32.vlgmr.msra.gmra.mrb[0].mxu0 %vm50_vm1, %v38_v11 }
  0x1d   :  { %345 = vmatprep.mubr.msk.f32.mxu0 %vm393_vm0, %v394_v1  ;;  %362 = vmatpush3.bf16.msra.mxu0 %v361_v22 }
  0xef   :  { %v120_v16 = vpop.f32.mrb[0].mxu0 }
  0xf0   :  { %v121_v17 = vadd.f32 %v300_v15, %v120_v16  ;;  %v329_v18 = vpop.f32.mrb[1].mxu0 }
  0xf2   :  { %v124_v19 = vmax.f32 %v121_v17, 0.0 }
  0xf4   :  { %339 = vmatmul.mubr.msk.f32.vlgmr.msra.gmra.mrb[0].mxu1 %vm50_vm1, %v124_v19 }
 0x1c7   :  { %v205_v24 = vpop.f32.mrb[0].mxu1 }
 0x1c8   :  { %v206_v25 = vadd.f32 %v302_v23, %v205_v24  ;;  %v340_v26 = vpop.f32.mrb[1].mxu1 }
 0x1ca   :  { %v209_v27 = vmax.f32 %v206_v25, 0.0 }
 0x1cc   :  { %346 = vmatmul.mubr.msk.f32.vlgmr.msra.gmra.mrb[2].mxu0 %vm219_vm2, %v209_v27 }
 0x29f   :  { %v289_v29 = vpop.f32.mrb[2].mxu0 }
 0x2a0   :  { %v290_v30 = vadd.f32 %v304_v28, %v289_v29  ;;  %v347_v31 = vpop.f32.mrb[3].mxu0 }
 0x2a2   :  { %294 = vst.msk [vmem:[%s499_s7] sm:$0xff] %vm293_vm3, %v290_v30 }
 0x2a3   :  { %299 = vsyncpa [#allocation3], 1 }

</bundles_post_ra>
